<compile_context>
chip_gen: v7x
topology: tpu7x:2x2x1
jax: 0.10.0
libtpu: 0.0.40
codegen_flags: <defaults>
</compile_context>

<pallas_src>
import jax
import jax.numpy as jnp
from jax.experimental import pallas as pl
from jax.experimental.pallas import tpu as pltpu

_LANES = 128
_SUBLANES = 8
_MAX_BLOCK_ROWS = 8192                 # (8192, 128) f32 = 4 MiB per buffer
_PALLAS_MIN_ELEMS = 64 * 1024          # below ~256 KiB use fused XLA instead
_VMEM_LIMIT_BYTES = 32 * 1024 * 1024   # 4 MiB x 2 bufs x (in + out) = 16 MiB


def _round_up(a, b):
    return ((a + b - 1) // b) * b


def _lr_kernel(p_ref, x_ref, o_ref):
    # p_ref: (2,) f32 in SMEM -> [weight, bias].
    # x_ref/o_ref: (block_rows, 128) lane-dense f32 tiles in VMEM.
    w = p_ref[0]
    b = p_ref[1]
    o_ref[...] = x_ref[...] * w + b


def lr_forward(x, weight, bias, *, force_pallas=False,
               max_block_rows=_MAX_BLOCK_ROWS):
    """Forward pass of LR: out = x @ weight.T + bias.

    x:      (N, 1) float32   (PyTorch (batch, in_features) layout)
    weight: (1, 1) float32   (nn.Linear(1, 1).weight)
    bias:   (1,)   float32   (nn.Linear(1, 1).bias)
    returns: (N, 1) float32
    """
    n = x.shape[0]
    x = x.astype(jnp.float32)
    w = weight.astype(jnp.float32).reshape(())
    b = bias.astype(jnp.float32).reshape(())

    if not force_pallas and n < _PALLAS_MIN_ELEMS:
        # Small-N fast path: fixed custom-call + pipeline prologue + pad/slice
        # overhead dominates; a fused XLA elementwise op is strictly cheaper.
        return (x * w + b).reshape(n, 1)

    params = jnp.stack([w, b])  # (2,) -> SMEM

    # Lane-dense repack: flatten and pad only to a whole number of (8, 128)
    # sublane/lane tiles (<= 1023 pad elements).  Skip the pad / un-pad copy
    # entirely when N is already aligned.
    rows = _round_up(pl.cdiv(n, _LANES), _SUBLANES)
    n_pad = rows * _LANES
    block_rows = min(rows, max_block_rows)
    grid = (pl.cdiv(rows, block_rows),)  # ragged last block is masked by Pallas

    x_flat = x.reshape(-1)
    if n_pad != n:
        x_flat = jnp.pad(x_flat, (0, n_pad - n))
    x_slab = x_flat.reshape(rows, _LANES)

    out_slab = pl.pallas_call(
        _lr_kernel,
        out_shape=jax.ShapeDtypeStruct((rows, _LANES), jnp.float32),
        grid=grid,
        in_specs=[
            pl.BlockSpec(memory_space=pltpu.SMEM),                 # [w, b]
            pl.BlockSpec((block_rows, _LANES), lambda i: (i, 0)),  # x tile
        ],
        out_specs=pl.BlockSpec((block_rows, _LANES), lambda i: (i, 0)),
        compiler_params=pltpu.CompilerParams(
            dimension_semantics=("parallel",),   # dual-TC sharding on v7x
            vmem_limit_bytes=_VMEM_LIMIT_BYTES,
        ),
    )(params, x_slab)

    out_flat = out_slab.reshape(-1)
    if n_pad != n:
        out_flat = out_flat[:n]
    return out_flat.reshape(n, 1)


if __name__ == "__main__":
    key = jax.random.PRNGKey(0)
    kw, kb = jax.random.split(key)

    # Deterministic parameter init mimicking nn.Linear(1, 1) default
    # (uniform in [-1/sqrt(in_features), 1/sqrt(in_features)] = [-1, 1]).
    weight = jax.random.uniform(kw, (1, 1), jnp.float32, minval=-1.0, maxval=1.0)
    bias = jax.random.uniform(kb, (1,), jnp.float32, minval=-1.0, maxval=1.0)

    # Same input construction as the PyTorch script: linspace(-3, 3, 1000)[:, None]
    x = jnp.expand_dims(jnp.linspace(-3.0, 3.0, 1000, dtype=jnp.float32), axis=1)
    ref = x @ weight.T + bias

    # 1) Pallas path (forced so the kernel is exercised even at small N).
    out = jax.block_until_ready(lr_forward(x, weight, bias, force_pallas=True))
    assert out.shape == (1000, 1)
    assert jnp.allclose(out, ref, atol=1e-6, rtol=1e-6)

    # 2) Ragged multi-step grid (cdiv grid, masked partial last block).
    x2 = jnp.expand_dims(jnp.linspace(-3.0, 3.0, 2500, dtype=jnp.float32), axis=1)
    ref2 = x2 @ weight.T + bias
    out2 = jax.block_until_ready(
        lr_forward(x2, weight, bias, force_pallas=True, max_block_rows=16))
    assert out2.shape == (2500, 1)
    assert jnp.allclose(out2, ref2, atol=1e-6, rtol=1e-6)

    # 3) Auto path: small N takes the fused-XLA fast path (no Pallas call).
    out3 = jax.block_until_ready(lr_forward(x, weight, bias))
    assert jnp.allclose(out3, ref, atol=1e-6, rtol=1e-6)

    print("KERNEL_OK")
</pallas_src>

<mosaic_0001>
module attributes {stable_mosaic.version = 11 : i64} {
  func.func @_lr_kernel(%arg0: i32, %arg1: memref<2xf32, #tpu.memory_space<smem>>, %arg2: memref<8x128xf32, #tpu.memory_space<vmem>>, %arg3: memref<8x128xf32, #tpu.memory_space<vmem>>) attributes {dimension_semantics = [#tpu.dimension_semantics<parallel>], iteration_bounds = array<i64: 1>, scalar_prefetch = 0 : i64, scratch_operands = 0 : i64, tpu.core_type = #tpu.core_type<tc>, window_params = [{transform_indices = @transform_0, window_bounds = array<i64: 2>}, {transform_indices = @transform_1, window_bounds = array<i64: 8, 128>}, {transform_indices = @transform_2, window_bounds = array<i64: 8, 128>}]} {
    %c0 = arith.constant 0 : index
    %0 = memref.load %arg1[%c0] : memref<2xf32, #tpu.memory_space<smem>>
    %c1 = arith.constant 1 : index
    %1 = memref.load %arg1[%c1] : memref<2xf32, #tpu.memory_space<smem>>
    %c0_0 = arith.constant 0 : index
    %c0_1 = arith.constant 0 : index
    %2 = vector.load %arg2[%c0_0, %c0_1] : memref<8x128xf32, #tpu.memory_space<vmem>>, vector<8x128xf32>
    %3 = vector.broadcast %0 : f32 to vector<8x128xf32>
    %4 = arith.mulf %2, %3 : vector<8x128xf32>
    %5 = vector.broadcast %1 : f32 to vector<8x128xf32>
    %6 = arith.addf %4, %5 : vector<8x128xf32>
    %c0_2 = arith.constant 0 : index
    %c0_3 = arith.constant 0 : index
    %7 = vector.load %arg3[%c0_2, %c0_3] : memref<8x128xf32, #tpu.memory_space<vmem>>, vector<8x128xf32>
    tpu.vector_store %arg3[%c0_2, %c0_3], %6 {strides = array<i32>} : memref<8x128xf32, #tpu.memory_space<vmem>>, vector<8x128xf32>,
    return
  }
  func.func @transform_0(%arg0: i32) -> i32 {
    %c0_i32 = arith.constant 0 : i32
    %c0_i32_0 = arith.constant 0 : i32
    return %c0_i32 : i32
  }
  func.func @transform_1(%arg0: i32) -> (i32, i32) {
    %c0_i32 = arith.constant 0 : i32
    %c0_i32_0 = arith.constant 0 : i32
    return %arg0, %c0_i32 : i32, i32
  }
  func.func @transform_2(%arg0: i32) -> (i32, i32) {
    %c0_i32 = arith.constant 0 : i32
    %c0_i32_0 = arith.constant 0 : i32
    return %arg0, %c0_i32 : i32, i32
  }
}

</mosaic_0001>

<bundles_post_ra>
// kernel: tpu_custom_call.1
= control target key start
LH: loop header
LB: loop body
LE: loop exit
PB: predicated region body
PF: predicated region fallthrough
CT: control target
= control target key end

     0   :  { %7 = vsyncpa [#allocation5], 0  ;;  %s177_s0 = inlined_call_operand.hbm [shape: f32[2], index: 0, kind: input, shape index: {}]   ;;  %s178_s1 = inlined_call_operand.hbm [shape: f32[8,128], index: 1, kind: input, shape index: {}]   ;;  %s179_s2 = inlined_call_operand.hbm [shape: f32[8,128], index: 2, kind: output, shape index: {}]  }
   0x1   :  { %8 = vsyncpa [#allocation3], 0 }
   0x2   :  { %9 = vsyncpa [#allocation4], 0  ;;  %s63_s11 = scalar_lea.hbm %s177_s0, 16 }
   0x3   :  { %p64_p0 = scmp.ne.s32.totalorder %s177_s0, %s63_s11  ;;  %p67_p1 = scmp.lt.u32.totalorder %s63_s11, %s177_s0 }
   0x5   :  { %p69_p2 = pnand %p67_p1, %p64_p0 }
   0x7   :  { %72 = shalt.err (!%p69_p2)
}
   0x8   :  { %s123_s16 = smov [#allocation2]   ;;  %s124_s19 = smov [#allocation6]  }
   0x9   :  { %17 = dma.hbm_to_smem %s177_s0, 16, %s123_s16, [#allocation5]  }
   0xa   :  { %s24_s20 = sshll.u32 %s124_s19, 4  ;;  %s73_s23 = scalar_lea.hbm %s178_s1, 128  ;;  %s25_s20 = int_to_ptr.vmem [resolvable:$true] %s24_s20 }
   0xb   :  { %p74_p3 = scmp.ne.s32.totalorder %s178_s1, %s73_s23  ;;  %p77_p4 = scmp.lt.u32.totalorder %s73_s23, %s178_s1 }
   0xd   :  { %p79_p5 = pnand %p77_p4, %p74_p3 }
   0xf   :  { %82 = shalt.err (!%p79_p5)
}
  0x10   :  { %s83_s28 = scalar_lea.vmem %s25_s20, 128  ;;  %p88_p7 = scmp.lt.s32.totalorder %s25_s20, %s25_s20 }
  0x11   :  { %p84_p6 = scmp.ne.s32.totalorder %s25_s20, %s83_s28  ;;  %p89_p8 = scmp.lt.s32.totalorder %s83_s28, %s83_s28 }
  0x13   :  { %p90_p9 = por %p89_p8, %p88_p7 }
  0x15   :  { %p91_p10 = pnand %p90_p9, %p84_p6 }
  0x17   :  { %94 = shalt.err (!%p91_p10)
}
  0x18   :  { %27 = dma.hbm_to_vmem [thread:$0]  %s178_s1, 128, %s25_s20, [#allocation3]  }
  0x19   :  { %117 = dma.done.wait [#allocation5], 16  }
  0x1a   :  { %118 = vsyncadd [#allocation5], 4294967280 }
  0x1b   :  { %119 = dma.done.wait [#allocation3], 128  }
  0x1c   :  { %120 = vsyncadd [#allocation3], 4294967168 }
  0x1d   :  { %34 = sfence }
  0x1e   :  { %s35_s30 = sld [smem:[#allocation2]]  ;;  %s59_s3 = sld [smem:[#allocation2 + $0x1]]  ;;  %v37_v0 = vld [vmem:[#allocation6] sm:$0xff] }
  0x1f   :  { %s125_s4 = smov [#allocation7]  }
  0x20   :  { %s49_s5 = sshll.u32 %s125_s4, 4  ;;  %s50_s5 = int_to_ptr.vmem [resolvable:$true] %s49_s5 }
  0x21   :  { %s95_s6 = scalar_lea.vmem %s50_s5, 128  ;;  %p100_p12 = scmp.lt.s32.totalorder %s50_s5, %s50_s5 }
  0x22   :  { %p96_p11 = scmp.ne.s32.totalorder %s50_s5, %s95_s6  ;;  %p101_p13 = scmp.lt.s32.totalorder %s95_s6, %s95_s6 }
  0x24   :  { %v38_v1 = vstv %s35_s30  ;;  %v40_v2 = vstv %s59_s3  ;;  %p102_p0 = por %p101_p13, %p100_p12 }
  0x25   :  { %v39_v3 = vmul.f32 %v38_v1, %v37_v0 }
  0x26   :  { %p103_p1 = pnand %p102_p0, %p96_p11 }
  0x27   :  { %v41_v4 = vadd.f32 %v40_v2, %v39_v3 }
  0x29   :  { %42 = vst [vmem:[#allocation7] sm:$0xff] %v41_v4 }
  0x2a   :  { %106 = shalt.err (!%p103_p1)
}
  0x2b   :  { %s107_s8 = scalar_lea.hbm %s179_s2, 128 }
  0x2c   :  { %p108_p2 = scmp.ne.s32.totalorder %s179_s2, %s107_s8  ;;  %p111_p3 = scmp.lt.u32.totalorder %s107_s8, %s179_s2 }
  0x2e   :  { %p113_p4 = pnand %p111_p3, %p108_p2 }
  0x30   :  { %116 = shalt.err (!%p113_p4)
}
  0x31   :  { %52 = dma.vmem_to_hbm [thread:$0]  %s50_s5, 128, %s179_s2, [#allocation4]  }
  0x32   :  { %121 = dma.done.wait [#allocation4], 128  }
  0x33   :  { %122 = vsyncadd [#allocation4], 4294967168 }
  0x34   :  { %56 = vsyncpa [#allocation3], 1 }
  0x35   :  { %57 = vsyncpa [#allocation4], 1 }
  0x36   :  { %58 = vsyncpa [#allocation5], 1 }

</bundles_post_ra>
